<compile_context>
chip_gen: v6e
topology: v6e:2x2x1
jax: 0.10.0
libtpu: 0.0.40
codegen_flags: <defaults>
</compile_context>

<pallas_src>
import functools

import jax
import jax.numpy as jnp
from jax.experimental import pallas as pl
from jax.experimental.pallas import tpu as pltpu


def _label_smoothing_kernel(pred_ref, tgt_ref, out_ref, cls_ref, acc_ref, *,
                            confidence, off_value, n_total, n_classes,
                            tile_n, tiles_per_part, use_mxu):
    p = pl.program_id(0)          # "parallel" part (megacore split on v7x)
    i = pl.program_id(1)          # "arbitrary" row-tile index within the part
    tn = tile_n
    c = n_classes

    @pl.when(i == 0)
    def _init():
        acc_ref[...] = jnp.zeros_like(acc_ref)
        # Hoisted class-id iota: generated once per part, reused by every tile.
        cls_ref[...] = jax.lax.broadcasted_iota(jnp.int32, (tn, c), 1)

    logical_tile = p * tiles_per_part + i               # UNCLAMPED logical tile id
    row_start = pl.multiple_of(logical_tile * tile_n, 8)
    tgt = tgt_ref[pl.ds(row_start, tile_n), :]           # (tn, 1) int32, VMEM-resident

    pred = pred_ref[...].astype(jnp.float32)             # (tn, c), f32 math in VMEM

    # Numerically stable log-softmax pieces: row-max on the XLU, exp on the EUP.
    m = jnp.max(pred, axis=-1, keepdims=True)
    shifted = pred - m
    exp_s = jnp.exp(shifted)

    # Fused smoothed-NLL weights (no materialized true_dist, single weighted sum):
    #   w_c = -conf at target class, -off elsewhere.
    onehot = cls_ref[...] == tgt                          # (tn, c) bool
    weighted = jnp.where(onehot, -confidence, -off_value) * shifted

    if use_mxu:
        # Route class-axis sums through the otherwise-idle MXU (f32 accumulation).
        ones_mat = jnp.ones((c, 128), jnp.float32)
        sum_exp = jnp.dot(exp_s, ones_mat,
                          preferred_element_type=jnp.float32)[:, :1]      # (tn, 1)
        s_term = jnp.dot(weighted, ones_mat,
                         preferred_element_type=jnp.float32)[:, :1]       # (tn, 1)
    else:
        # Small-C path: XLU lane reductions (mem-bound regime, MXU padding not worth it).
        sum_exp = jnp.sum(exp_s, axis=-1, keepdims=True)
        s_term = jnp.sum(weighted, axis=-1, keepdims=True)

    lse = jnp.log(sum_exp)                                # (tn, 1)
    coef_lse = off_value * (c - 1) + confidence           # == 1.0 when c == classes
    row_loss = s_term + coef_lse * lse                    # (tn, 1)

    # Mask rows past the true batch size (padded tail tiles and the clamped
    # re-read tile of the unconditional 2-way split contribute exactly zero).
    row_ids = logical_tile * tile_n + jax.lax.broadcasted_iota(jnp.int32, (tn, 1), 0)
    row_loss = jnp.where(row_ids < n_total, row_loss, 0.0)

    # Per-row accumulator: no per-tile sublane reduce, collapse only at finalize.
    acc_ref[...] += row_loss

    @pl.when(i == pl.num_programs(1) - 1)
    def _finalize():
        total = jnp.sum(acc_ref[...], axis=0, keepdims=True)              # (1, 1)
        out_ref[...] = jnp.broadcast_to(total, out_ref.shape)


def _choose_tile_n(n, c):
    """Row-tile size targeting ~1M elements per tile (~4 MiB of f32 intermediates),
    rows rounded to a multiple of 8, capped only by the (padded) batch size."""
    if n <= 8:
        return n                      # block equal to the full dim is always legal
    max_elems = 1 << 20               # ~4 MiB per f32 intermediate, ~8-fold total fits 48 MiB
    t = max(8, max_elems // max(1, c))
    t -= t % 8
    n_up = -(-n // 8) * 8
    return int(min(t, n_up))


def label_smoothing_loss(pred, target, classes, smoothing=0.0, *, tile_n=None):
    """pred: (N, C) float32/bfloat16, target: (N,) int. Returns scalar float32 loss."""
    n, c = pred.shape
    confidence = 1.0 - smoothing
    off_value = smoothing / (classes - 1)

    if tile_n is None:
        tile_n = _choose_tile_n(n, c)
    n_tiles = pl.cdiv(n, tile_n)

    # Unconditional 2-way TensorCore split whenever there is more than one tile.
    num_parts = 2 if n_tiles >= 2 else 1
    tiles_per_part = pl.cdiv(n_tiles, num_parts)
    padded_n = num_parts * tiles_per_part * tile_n

    # One resident, padded target buffer (int32), sliced with pl.ds in the kernel.
    tgt2d = jnp.zeros((padded_n, 1), jnp.int32).at[:n, 0].set(target.astype(jnp.int32))

    use_mxu = c >= 128

    kernel = functools.partial(
        _label_smoothing_kernel,
        confidence=confidence, off_value=off_value, n_total=n, n_classes=c,
        tile_n=tile_n, tiles_per_part=tiles_per_part, use_mxu=use_mxu)

    last_tile = n_tiles - 1

    def pred_map(p, i):
        # Clamped block index: the (at most one) overhanging tile of the 2-way
        # split re-reads the last real tile; its rows are masked in-kernel.
        return (jnp.minimum(p * tiles_per_part + i, last_tile), 0)

    out = pl.pallas_call(
        kernel,
        out_shape=jax.ShapeDtypeStruct((num_parts * 8, 128), jnp.float32),
        grid_spec=pltpu.PrefetchScalarGridSpec(
            num_scalar_prefetch=0,
            grid=(num_parts, tiles_per_part),
            in_specs=[
                pl.BlockSpec((tile_n, c), pred_map),
                pl.BlockSpec((padded_n, 1), lambda p, i: (0, 0)),   # resident targets
            ],
            out_specs=pl.BlockSpec((8, 128), lambda p, i: (p, 0)),
            scratch_shapes=[
                pltpu.VMEM((tile_n, c), jnp.int32),    # hoisted class-id iota
                pltpu.VMEM((tile_n, 1), jnp.float32),  # per-row loss accumulator
            ],
        ),
        compiler_params=pltpu.CompilerParams(
            dimension_semantics=("parallel", "arbitrary"),
            vmem_limit_bytes=48 * 1024 * 1024),
        cost_estimate=pl.CostEstimate(
            flops=8 * n * c + (2 * n * c if use_mxu else 0),
            transcendentals=n * c + n,
            bytes_accessed=n * c * pred.dtype.itemsize + padded_n * 4
                           + num_parts * 8 * 128 * 4),
    )(pred, tgt2d)

    # Each part broadcast-fills its (8,128) block with its partial sum.
    partials = out.reshape(num_parts, 8, 128)[:, 0, 0]
    return jnp.sum(partials) / jnp.float32(n)


def _reference(pred, target, classes, smoothing):
    # Pure-JAX reference mirroring the PyTorch forward (f32 math).
    logp = jax.nn.log_softmax(pred.astype(jnp.float32), axis=-1)
    confidence = 1.0 - smoothing
    off = smoothing / (classes - 1)
    true_dist = jnp.full_like(logp, off)
    true_dist = true_dist.at[jnp.arange(pred.shape[0]), target].set(confidence)
    return jnp.mean(jnp.sum(-true_dist * logp, axis=-1))


if __name__ == "__main__":
    key = jax.random.PRNGKey(0)
    k1, k2, k3, k4, k5, k6 = jax.random.split(key, 6)

    # Case 1: multi-tile accumulation + 2-way core split (grid = (2, 2)), small C (XLU path).
    N1, C1, s1 = 64, 32, 0.1
    pred1 = jax.random.normal(k1, (N1, C1), dtype=jnp.float32)
    tgt1 = jax.random.randint(k2, (N1,), 0, C1, dtype=jnp.int32)
    loss1 = jax.block_until_ready(
        label_smoothing_loss(pred1, tgt1, classes=C1, smoothing=s1, tile_n=16))
    ref1 = _reference(pred1, tgt1, C1, s1)
    assert jnp.allclose(loss1, ref1, atol=1e-4, rtol=1e-4), (loss1, ref1)

    # Case 2: N not a multiple of the row tile + odd tile count (clamped split + tail mask).
    N2, C2, s2 = 20, 32, 0.2
    pred2 = jax.random.normal(k3, (N2, C2), dtype=jnp.float32)
    tgt2 = jax.random.randint(k4, (N2,), 0, C2, dtype=jnp.int32)
    loss2 = jax.block_until_ready(
        label_smoothing_loss(pred2, tgt2, classes=C2, smoothing=s2, tile_n=8))
    ref2 = _reference(pred2, tgt2, C2, s2)
    assert jnp.allclose(loss2, ref2, atol=1e-4, rtol=1e-4), (loss2, ref2)

    # Case 3: bf16 input (halved HBM traffic), large C -> MXU reduction path, f32 math inside.
    N3, C3, s3 = 128, 512, 0.1
    pred3 = jax.random.normal(k5, (N3, C3), dtype=jnp.float32).astype(jnp.bfloat16)
    tgt3 = jax.random.randint(k6, (N3,), 0, C3, dtype=jnp.int32)
    loss3 = jax.block_until_ready(
        label_smoothing_loss(pred3, tgt3, classes=C3, smoothing=s3))
    ref3 = _reference(pred3, tgt3, C3, s3)
    assert jnp.allclose(loss3, ref3, atol=1e-4, rtol=1e-4), (loss3, ref3)

    print("KERNEL_OK")
</pallas_src>

<mosaic_0001>
module attributes {stable_mosaic.version = 11 : i64} {
  func.func @_label_smoothing_kernel(%arg0: i32, %arg1: i32, %arg2: memref<16x32xf32, #tpu.memory_space<vmem>>, %arg3: memref<64x1xi32, #tpu.memory_space<vmem>>, %arg4: memref<8x128xf32, #tpu.memory_space<vmem>>, %arg5: memref<16x32xi32, #tpu.memory_space<vmem>>, %arg6: memref<16x1xf32, #tpu.memory_space<vmem>>) attributes {dimension_semantics = [#tpu.dimension_semantics<parallel>, #tpu.dimension_semantics<arbitrary>], iteration_bounds = array<i64: 2, 2>, scalar_prefetch = 0 : i64, scratch_operands = 2 : i64, tpu.core_type = #tpu.core_type<tc>, window_params = [{transform_indices = @transform_0, window_bounds = array<i64: 16, 32>}, {pipeline_mode = #tpu.pipeline_mode<synchronous>, transform_indices = @transform_1, window_bounds = array<i64: 64, 1>}, {transform_indices = @transform_2, window_bounds = array<i64: 8, 128>}]} {
    %c0_i32 = arith.constant 0 : i32
    %0 = arith.cmpi eq, %arg1, %c0_i32 : i32
    %1 = arith.extui %0 : i1 to i32
    %c0_i32_0 = arith.constant 0 : i32
    %2 = arith.cmpi ne, %1, %c0_i32_0 : i32
    scf.if %2 {
      %cst_17 = arith.constant 0.000000e+00 : f32
      %44 = vector.broadcast %cst_17 : f32 to vector<16x1xf32>
      %c0_18 = arith.constant 0 : index
      %c0_19 = arith.constant 0 : index
      %45 = vector.load %arg6[%c0_18, %c0_19] : memref<16x1xf32, #tpu.memory_space<vmem>>, vector<16x1xf32>
      tpu.vector_store %arg6[%c0_18, %c0_19], %44 {strides = array<i32>} : memref<16x1xf32, #tpu.memory_space<vmem>>, vector<16x1xf32>,
      %46 = tpu.iota {dimensions = array<i32: 1>} : vector<16x32xi32>
      %c0_20 = arith.constant 0 : index
      %c0_21 = arith.constant 0 : index
      %47 = vector.load %arg5[%c0_20, %c0_21] : memref<16x32xi32, #tpu.memory_space<vmem>>, vector<16x32xi32>
      tpu.vector_store %arg5[%c0_20, %c0_21], %46 {strides = array<i32>} : memref<16x32xi32, #tpu.memory_space<vmem>>, vector<16x32xi32>,
    } else {
    }
    %c2_i32 = arith.constant 2 : i32
    %3 = arith.muli %arg0, %c2_i32 : i32
    %4 = arith.addi %3, %arg1 : i32
    %c16_i32 = arith.constant 16 : i32
    %5 = arith.muli %4, %c16_i32 : i32
    %6 = tpu.assume_multiple %5, 8 : i32
    %7 = arith.index_cast %6 : i32 to index
    %c0 = arith.constant 0 : index
    %8 = vector.load %arg3[%7, %c0] : memref<64x1xi32, #tpu.memory_space<vmem>>, vector<16x1xi32>
    %c0_1 = arith.constant 0 : index
    %c0_2 = arith.constant 0 : index
    %9 = vector.load %arg2[%c0_1, %c0_2] : memref<16x32xf32, #tpu.memory_space<vmem>>, vector<16x32xf32>
    %cst = arith.constant dense<0xFF800000> : vector<16xf32>
    %10 = vector.multi_reduction <maximumf>, %9, %cst [1] : vector<16x32xf32> to vector<16xf32>
    %11 = vector.shape_cast %10 : vector<16xf32> to vector<16x1xf32>
    %12 = vector.broadcast %11 : vector<16x1xf32> to vector<16x32xf32>
    %13 = arith.subf %9, %12 : vector<16x32xf32>
    %14 = math.exp %13 : vector<16x32xf32>
    %c0_3 = arith.constant 0 : index
    %c0_4 = arith.constant 0 : index
    %15 = vector.load %arg5[%c0_3, %c0_4] : memref<16x32xi32, #tpu.memory_space<vmem>>, vector<16x32xi32>
    %16 = vector.broadcast %8 : vector<16x1xi32> to vector<16x32xi32>
    %17 = arith.cmpi eq, %15, %16 : vector<16x32xi32>
    %cst_5 = arith.constant -0.899999976 : f32
    %cst_6 = arith.constant -0.0032258064 : f32
    %18 = vector.broadcast %cst_5 : f32 to vector<16x32xf32>
    %19 = vector.broadcast %cst_6 : f32 to vector<16x32xf32>
    %20 = arith.select %17, %18, %19 : vector<16x32xi1>, vector<16x32xf32>
    %21 = arith.mulf %20, %13 : vector<16x32xf32>
    %cst_7 = arith.constant dense<0.000000e+00> : vector<16xf32>
    %22 = vector.multi_reduction <add>, %14, %cst_7 [1] : vector<16x32xf32> to vector<16xf32>
    %23 = vector.shape_cast %22 : vector<16xf32> to vector<16x1xf32>
    %cst_8 = arith.constant dense<0.000000e+00> : vector<16xf32>
    %24 = vector.multi_reduction <add>, %21, %cst_8 [1] : vector<16x32xf32> to vector<16xf32>
    %25 = vector.shape_cast %24 : vector<16xf32> to vector<16x1xf32>
    %26 = math.log %23 : vector<16x1xf32>
    %cst_9 = arith.constant 1.000000e+00 : f32
    %27 = vector.broadcast %cst_9 : f32 to vector<16x1xf32>
    %28 = arith.mulf %27, %26 : vector<16x1xf32>
    %29 = arith.addf %25, %28 : vector<16x1xf32>
    %c16_i32_10 = arith.constant 16 : i32
    %30 = arith.muli %4, %c16_i32_10 : i32
    %31 = tpu.iota {dimensions = array<i32: 0>} : vector<16x1xi32>
    %32 = vector.broadcast %30 : i32 to vector<16x1xi32>
    %33 = arith.addi %32, %31 : vector<16x1xi32>
    %c64_i32 = arith.constant 64 : i32
    %34 = vector.broadcast %c64_i32 : i32 to vector<16x1xi32>
    %35 = arith.cmpi slt, %33, %34 : vector<16x1xi32>
    %cst_11 = arith.constant 0.000000e+00 : f32
    %36 = vector.broadcast %cst_11 : f32 to vector<16x1xf32>
    %37 = arith.select %35, %29, %36 : vector<16x1xi1>, vector<16x1xf32>
    %c0_12 = arith.constant 0 : index
    %c0_13 = arith.constant 0 : index
    %38 = vector.load %arg6[%c0_12, %c0_13] : memref<16x1xf32, #tpu.memory_space<vmem>>, vector<16x1xf32>
    %39 = arith.addf %38, %37 : vector<16x1xf32>
    %c0_14 = arith.constant 0 : index
    %c0_15 = arith.constant 0 : index
    %40 = vector.load %arg6[%c0_14, %c0_15] : memref<16x1xf32, #tpu.memory_space<vmem>>, vector<16x1xf32>
    tpu.vector_store %arg6[%c0_14, %c0_15], %39 {strides = array<i32>} : memref<16x1xf32, #tpu.memory_space<vmem>>, vector<16x1xf32>,
    %c1_i32 = arith.constant 1 : i32
    %41 = arith.cmpi eq, %arg1, %c1_i32 : i32
    %42 = arith.extui %41 : i1 to i32
    %c0_i32_16 = arith.constant 0 : i32
    %43 = arith.cmpi ne, %42, %c0_i32_16 : i32
    scf.if %43 {
      %c0_17 = arith.constant 0 : index
      %c0_18 = arith.constant 0 : index
      %44 = vector.load %arg6[%c0_17, %c0_18] : memref<16x1xf32, #tpu.memory_space<vmem>>, vector<16x1xf32>
      %cst_19 = arith.constant dense<0.000000e+00> : vector<1xf32>
      %45 = vector.multi_reduction <add>, %44, %cst_19 [0] : vector<16x1xf32> to vector<1xf32>
      %46 = vector.shape_cast %45 : vector<1xf32> to vector<1x1xf32>
      %47 = vector.shape_cast %46 : vector<1x1xf32> to vector<1x1xf32>
      %48 = vector.broadcast %47 : vector<1x1xf32> to vector<8x128xf32>
      %c0_20 = arith.constant 0 : index
      %c0_21 = arith.constant 0 : index
      %49 = vector.load %arg4[%c0_20, %c0_21] : memref<8x128xf32, #tpu.memory_space<vmem>>, vector<8x128xf32>
      tpu.vector_store %arg4[%c0_20, %c0_21], %48 {strides = array<i32>} : memref<8x128xf32, #tpu.memory_space<vmem>>, vector<8x128xf32>,
    } else {
    }
    return
  }
  func.func @transform_0(%arg0: i32, %arg1: i32) -> (i32, i32) {
    %c2_i32 = arith.constant 2 : i32
    %0 = arith.muli %arg0, %c2_i32 : i32
    %1 = arith.addi %0, %arg1 : i32
    %c3_i32 = arith.constant 3 : i32
    %2 = arith.minsi %1, %c3_i32 : i32
    %c0_i32 = arith.constant 0 : i32
    %c0_i32_0 = arith.constant 0 : i32
    return %2, %c0_i32 : i32, i32
  }
  func.func @transform_1(%arg0: i32, %arg1: i32) -> (i32, i32) {
    %c0_i32 = arith.constant 0 : i32
    %c0_i32_0 = arith.constant 0 : i32
    %c0_i32_1 = arith.constant 0 : i32
    return %c0_i32, %c0_i32_0 : i32, i32
  }
  func.func @transform_2(%arg0: i32, %arg1: i32) -> (i32, i32) {
    %c0_i32 = arith.constant 0 : i32
    %c0_i32_0 = arith.constant 0 : i32
    return %arg0, %c0_i32 : i32, i32
  }
}

</mosaic_0001>

<bundles_post_ra>
// kernel: tpu_custom_call.1
= control target key start
LH: loop header
LB: loop body
LE: loop exit
PB: predicated region body
PF: predicated region fallthrough
CT: control target
= control target key end

     0   :  { %7 = vsyncpa [#allocation5], 0  ;;  %s748_s0 = inlined_call_operand.vmem [shape: f32[64,32], index: 0, kind: input, shape index: {}]   ;;  %s749_s1 = inlined_call_operand.vmem [shape: s32[64,1], index: 1, kind: input, shape index: {}]   ;;  %s750_s2 = inlined_call_operand.hbm [shape: f32[16,128], index: 2, kind: output, shape index: {}]  }
   0x1   :  { %9 = vsyncpa [#allocation5 + $0x1], 0  ;;  %s594_s9 = smov 0   ;;  %s596_s10 = smov 0  }
   0x2   :  { %s598_s11 = smov 0   ;;  %s600_s12 = smov 0  }
   0x3   :  { %s602_s13 = smov 0   ;;  %s604_s14 = smov 0  }
   0x4   :  { %s606_s15 = smov 0   ;;  %s608_s16 = smov 0  }
   0x5 LB: > { %s375_s17 = sadd.s32 4294967295, %s572_s16   ;;  %s376_s18 = sadd.s32 4294967294, %s572_s16   ;;  %s572_s16 = sphi %s608_s16, %s15_s16   ;;  %s568_s15 = sphi %s606_s15, %s759_s15   ;;  %s564_s14 = sphi %s604_s14, %s758_s14   ;;  %s560_s13 = sphi %s602_s13, %s757_s13   ;;  %s556_s12 = sphi %s600_s12, %s756_s12   ;;  %s552_s11 = sphi %s598_s11, %s755_s11   ;;  %s548_s10 = sphi %s596_s10, %s754_s10   ;;  %s544_s9 = sphi %s594_s9, %s753_s9  }
   0x6   : > { %s24_s19 = sadd.s32 1, %s564_s14  ;;  %s27_s20 = sadd.s32 1, %s568_s15 }
   0x7   : > { %p25_p0 = scmp.ge.s32.totalorder %s24_s19, 2  ;;  %p99_p1 = scmp.ne.s32.totalorder %s552_s11, %s548_s10 }
   0x8   : > { %p100_p2 = scmp.eq.s32.totalorder %s375_s17, 3  ;;  %p105_p4 = scmp.ne.s32.totalorder %s548_s10, %s544_s9 }
   0x9   : > { %s761_s19 = smov (%p25_p0, %s24_s19), 0  ;;  %s763_s20 = smov (!%p25_p0, %s27_s20), %s568_s15 }
   0xa   : > { %p643_p3 = por %p100_p2, %p99_p1  ;;  %p29_p5 = scmp.ge.s32.totalorder %s763_s20, 2 }
   0xb   : > { %p106_p6 = scmp.eq.s32.totalorder %s376_s18, 3  ;;  %p381_p7 = scmp.ge.s32.totalorder %s572_s16, 1 }
   0xc   : > { %p144_p8 = scmp.lt.s32.totalorder %s572_s16, 5  ;;  %s765_s20 = smov (%p29_p5, %s763_s20), 0 }
   0xd   : > { %p653_p9 = por %p106_p6, %p105_p4  ;;  %s86_s23 = ssub.s32 %s568_s15, %s765_s20 }
   0xe   : > { %p145_p10 = pnand %p381_p7, %p144_p8  ;;  %s89_s24 = sadd.s32 1, %s552_s11 }
   0xf   : > { %p87_p11 = scmp.eq.s32.totalorder %s86_s23, 0  ;;  %s167_s26 = sand.u32 (!%p145_p10), 1, %s548_s10  }
  0x10   : > { %148 = sbr.rel (%p145_p10) target bundleno = 527 (0x20f), region = 28  ;;  %s383_s27 = sshll.u32 (!%p145_p10), %s560_s13, 1 }
  0x11   : > { %s661_s25 = scalar_select %p87_p11, %s552_s11, %s89_s24  }
  0x12   : > { %s667_s28 = sshll.u32 (!%p145_p10), %s167_s26, 3  ;;  %s670_s29 = sadd.s32 (!%p145_p10), %s556_s12, %s383_s27 }
  0x13   : > { %p172_p12 = scmp.lt.s32.totalorder (!%p145_p10), %s670_s29, 3  ;;  %s169_s8 = scalar_lea.vmem (!%p145_p10), [#allocation4], %s667_s28 }
  0x14   : > { %p386_p0 = scmp.ne.s32.totalorder (!%p145_p10), %s556_s12, 0 }
  0x15   : > { %s173_s30 = scalar_select %p172_p12, %s670_s29, 3 }
  0x17   : > { %s384_s3 = sshll.u32 %s173_s30, 1 }
  0x18   : > { %p175_p13 = scmp.lt.s32.totalorder %s384_s3, 7  ;;  %187 = sbr.rel (%p386_p0) target bundleno = 34 (0x22), region = 32 }
  0x1a   : > { %s767_s3 = smov (!%p175_p13, %s384_s3), 7 }
  0x1b   : > { %s385_s4 = sshll.u32 %s767_s3, 3 }
  0x1c   : > { %s178_s7 = scalar_lea.vmem %s748_s0, %s385_s4 }
  0x1d   : > { %vm188_vm0 = vcmask 7168   ;;  %v191_v0 = vlaneseq  ;;  %v574_v1 = vmov 0.0   ;;  %vm193_vm1 = vcmask 261120  }
  0x1e   : > { %189 = vst.msk [vmem:[#allocation3] sm:$0xff] %vm188_vm0, %v574_v1  ;;  %190 = vst.msk [vmem:[#allocation3 + $0x8] sm:$0xff] %vm188_vm0, %v574_v1 }
  0x1f   : > { %v192_v2 = vand.u32 127, %v191_v0 }
  0x21   : > { %194 = vst.msk [vmem:[#allocation2] sm:$0xff] %vm193_vm1, %v192_v2  ;;  %195 = vst.msk [vmem:[#allocation2 + $0x8] sm:$0xff] %vm193_vm1, %v192_v2 }
  0x22 PF: > { %v202_v3 = vld [vmem:[%s178_s7] sm:$0xff]  ;;  %vm204_vm2 = vcmask 261120   ;;  %v203_v4 = vld [vmem:[%s178_s7 + $0x8] sm:$0xff]  ;;  %s388_s17 = sshll.u32 %s670_s29, 4  ;;  %v575_v6 = vmov 0   ;;  %v249_v32 = vlaneseq  ;;  %vm263_vm6 = vcmask 7168  }
  0x23   : > { %v205_v5 = vsel %vm204_vm2, %v202_v3, -inf  ;;  %469 = vset.pattern.permute.xlu1 %v575_v6  ;;  %s199_s24 = scalar_lea.vmem %s749_s1, %s388_s17  ;;  %470 = vset.pattern.permute.xlu0 %v575_v6  ;;  %v208_v8 = vsel %vm204_vm2, %v203_v4, -inf  ;;  %v576_v20 = vmov -0.0032258064   ;;  %v252_v35 = vstv %s388_s17  ;;  %p389_p1 = scmp.ne.s32.totalorder %s556_s12, 1 }
  0x24   : > { %206 = vmax.xlane.f32.xlu0 %v205_v5  ;;  %v200_v7 = vld [vmem:[%s199_s24] sm:$0xff]  ;;  %v201_v9 = vld [vmem:[%s199_s24 + $0x8] sm:$0xff]  ;;  %v250_v34 = vshrl.u32 %v249_v32, 7 }
  0x25   : > { %220 = vperm.xlu1 %469, %v200_v7   ;;  %v259_v42 = vld [vmem:[#allocation3] sm:$0xff]  ;;  %v260_v49 = vld [vmem:[#allocation3 + $0x8] sm:$0xff] }
  0x26   : > { %v253_v36 = vadd.s32 %v252_v35, %v250_v34  ;;  %v251_v37 = vadd.s32 8, %v250_v34 }
  0x28   : > { %209 = vmax.xlane.f32.xlu0 %v208_v8  ;;  %v217_v17 = vld [vmem:[#allocation2] sm:$0xff]  ;;  %v218_v18 = vld [vmem:[#allocation2 + $0x8] sm:$0xff]  ;;  %vm255_vm5 = vcmp.lt.s32.totalorder %v253_v36, 64  ;;  %v254_v41 = vadd.s32 %v252_v35, %v251_v37 }
  0x29   : > { %223 = vperm.xlu1 %469, %v201_v9  }
  0x2a   : > { %vm256_vm7 = vcmp.lt.s32.totalorder %v254_v41, 64 }
  0xa0   : > { %v221_v16 = vpop.permute.xlu1 %220 }
  0xa1   : > { %vm225_vm3 = vcmp.eq.s32.totalorder %v217_v17, %v221_v16 }
  0xa2   : > { %v227_v21 = vsel %vm225_vm3, -0.9, %v576_v20 }
  0xa4   : > { %v224_v19 = vpop.permute.xlu1 %223 }
  0xa5   : > { %vm226_vm4 = vcmp.eq.s32.totalorder %v218_v18, %v224_v19 }
  0xa6   : > { %v228_v25 = vsel %vm226_vm4, -0.9, %v576_v20 }
  0xad   : > { %v207_v10 = vpop.xlane.xlu0 %206 }
  0xae   : > { %v211_v11 = vsub.f32 %v202_v3, %v207_v10 }
  0xb0   : > { %v213_v12 = vmul.f32 1.442695, %v211_v11  ;;  %v229_v24 = vmul.f32 %v227_v21, %v211_v11 }
  0xb1   : > { %v210_v13 = vpop.xlane.xlu0 %209 }
  0xb2   : > { %471 = vpow2.f32 %v213_v12  ;;  %v212_v14 = vsub.f32 %v203_v4, %v210_v13  ;;  %v237_v28 = vsel %vm204_vm2, %v229_v24, 0.0 }
  0xb4   : > { %v215_v15 = vmul.f32 1.442695, %v212_v14  ;;  %v230_v29 = vmul.f32 %v228_v25, %v212_v14 }
  0xb6   : > { %473 = vpow2.f32 %v215_v15  ;;  %v240_v30 = vsel %vm204_vm2, %v230_v29, 0.0 }
  0xbf   : > { %v472_v22 = vpop.eup %471 }
  0xc0   : > { %v231_v23 = vsel %vm204_vm2, %v472_v22, 0.0 }
  0xc1   : > { %232 = vadd.xlane.f32.xlu0 %v231_v23 }
  0xc3   : > { %v474_v26 = vpop.eup %473 }
  0xc4   : > { %v234_v27 = vsel %vm204_vm2, %v474_v26, 0.0 }
  0xc5   : > { %235 = vadd.xlane.f32.xlu1 %v234_v27  ;;  %238 = vadd.xlane.f32.xlu0 %v237_v28 }
  0xc9   : > { %241 = vadd.xlane.f32.xlu0 %v240_v30 }
 0x14a   : > { %v233_v31 = vpop.xlane.xlu0 %232 }
 0x14b   : > { %475 = vlog2.f32 %v233_v31 }
 0x14e   : > { %v236_v33 = vpop.xlane.xlu1 %235  ;;  %v239_v39 = vpop.xlane.xlu0 %238 }
 0x14f   : > { %477 = vlog2.f32 %v236_v33 }
 0x152   : > { %v242_v48 = vpop.xlane.xlu0 %241 }
 0x158   : > { %v476_v38 = vpop.eup %475 }
 0x159   : > { %v244_v40 = vmul.f32 0.6931472, %v476_v38 }
 0x15b   : > { %v247_v43 = vadd.f32 %v244_v40, %v239_v39 }
 0x15c   : > { %v478_v44 = vpop.eup %477 }
 0x15d   : > { %v257_v45 = vsel %vm255_vm5, %v247_v43, 0.0  ;;  %v246_v46 = vmul.f32 0.6931472, %v478_v44 }
 0x15e   : > { %v261_v47 = vadd.f32 %v259_v42, %v257_v45 }
 0x15f   : > { %v248_v50 = vadd.f32 %v246_v46, %v242_v48 }
 0x160   : > { %264 = vst.msk [vmem:[#allocation3] sm:$0xff] %vm263_vm6, %v261_v47  ;;  %269 = sbr.rel (%p389_p1) target bundleno = 504 (0x1f8), region = 36 }
 0x161   : > { %v258_v51 = vsel %vm256_vm7, %v248_v50, 0.0 }
 0x162   : > { %v262_v52 = vadd.f32 %v260_v49, %v258_v51 }
 0x164   : > { %265 = vst.msk [vmem:[#allocation3 + $0x8] sm:$0xff] %vm263_vm6, %v262_v52 }
 0x165   : > { %v577_v55 = vmov 0  }
 0x166   : > { %479 = vset.pattern.permute.xlu0 %v577_v55 }
 0x167   : > { %v270_v53 = vld [vmem:[#allocation3] sm:$0xff] }
 0x168   : > { %v272_v56 = vsel %vm263_vm6, %v270_v53, 0.0 }
 0x16b   : > { %v271_v54 = vld [vmem:[#allocation3 + $0x8] sm:$0xff] }
 0x16c   : > { %v273_v57 = vsel %vm263_vm6, %v271_v54, 0.0 }
 0x16d   : > { %v274_v58 = vadd.f32 %v273_v57, %v272_v56 }
 0x16f   : > { %v275_v59 = vrot.slane %v274_v58, 4 }
 0x171   : > { %v276_v60 = vadd.f32 %v275_v59, %v274_v58 }
 0x173   : > { %v277_v61 = vrot.slane %v276_v60, 2 }
 0x175   : > { %v278_v62 = vadd.f32 %v277_v61, %v276_v60 }
 0x177   : > { %v279_v63 = vrot.slane %v278_v62, 1 }
 0x179   : > { %v280_v0 = vadd.f32 %v279_v63, %v278_v62 }
 0x17b   : > { %283 = vperm.xlu0 %479, %v280_v0  }
 0x1f6   : > { %v284_v1 = vpop.permute.xlu0 %283 }
 0x1f7   : > { %286 = vst [vmem:[%s169_s8] sm:$0xff] %v284_v1 }
 0x1f8 PF: > { %s391_s12 = sshll.u32 %s560_s13, 7  ;;  %s301_s3 = sshll.u32 %s169_s8, 4  ;;  %s302_s3 = int_to_ptr.vmem [resolvable:$true] %s301_s3 }
 0x1f9   : > { %s299_s30 = scalar_lea.hbm %s750_s2, %s391_s12  ;;  %s288_s4 = scalar_lea.sflag [#allocation5], %s167_s26 }
 0x1fa   : > { %s480_s5 = scalar_lea.vmem %s302_s3, 128  ;;  %s578_s6 = smov [#allocation4]  }
 0x1fb   : > { %p481_p2 = scmp.ne.s32.totalorder %s302_s3, %s480_s5  ;;  %s484_s7 = sshll.u32 %s578_s6, 4  ;;  %s485_s7 = int_to_ptr.vmem [resolvable:$false] %s484_s7 }
 0x1fc   : > { %s486_s17 = scalar_lea.vmem %s485_s7, 256  ;;  %p487_p6 = scmp.lt.s32.totalorder %s302_s3, %s485_s7 }
 0x1fd   : > { %p482_p4 = pnand %p481_p2, %p643_p3  ;;  %p488_p7 = scmp.lt.s32.totalorder %s486_s17, %s480_s5 }
 0x1ff   : > { %p483_p5 = pneg %p482_p4  ;;  %p489_p8 = por %p488_p7, %p487_p6 }
 0x201   : > { %p490_p10 = pnand %p489_p8, %p483_p5 }
 0x203   : > { %493 = shalt.err (!%p490_p10)
}
 0x204   : > { %s494_s13 = scalar_lea.hbm %s299_s30, 128  ;;  %s498_s8 = scalar_lea.hbm %s750_s2, 256 }
 0x205   : > { %p495_p11 = scmp.ne.s32.totalorder %s299_s30, %s494_s13  ;;  %p499_p0 = scmp.lt.s32.totalorder %s299_s30, %s750_s2 }
 0x206   : > { %p500_p1 = scmp.lt.s32.totalorder %s498_s8, %s494_s13 }
 0x207   : > { %p496_p12 = pnand %p495_p11, %p643_p3 }
 0x208   : > { %p501_p2 = por %p500_p1, %p499_p0 }
 0x209   : > { %p497_p13 = pneg %p496_p12 }
 0x20b   : > { %p502_p4 = pnand %p501_p2, %p497_p13 }
 0x20d   : > { %505 = shalt.err (!%p502_p4)
}
 0x20e   : > { %394 = dma.vmem_to_hbm [thread:$0]  (%p643_p3), %s302_s3, 128, %s299_s30, %s288_s4  }
 0x20f PF: > { %p400_p5 = scmp.ge.s32.totalorder %s572_s16, 2  ;;  %s313_s24 = sand.u32 1, %s544_s9  }
 0x210   : > { %s314_s12 = scalar_lea.sflag [#allocation5], %s313_s24 }
 0x211   : > { %p397_p6 = pnand %p400_p5, %p653_p9 }
 0x213   : > { %p398_p7 = pneg %p397_p6 }
 0x215   : > { %539 = dma.done.wait (%p398_p7), %s314_s12, 128  }
 0x216   : > { %541 = vsyncadd (%p398_p7), %s314_s12, 4294967168  ;;  %s15_s16 = sadd.s32 1, %s572_s16   ;;  %s753_s9 = smov %s548_s10 }
 0x217   : > { %p12_p8 = scmp.ge.s32.totalorder %s15_s16, 6   ;;  %s754_s10 = smov %s552_s11 }
 0x218   : > { %s755_s11 = smov %s661_s25  ;;  %s756_s12 = smov %s564_s14 }
 0x219   : > { %s757_s13 = smov %s568_s15  ;;  %s758_s14 = smov %s761_s19 }
 0x21a   : > { %s759_s15 = smov %s765_s20  ;;  %14 = sbr.rel (!%p12_p8) target bundleno = 5 (0x5), region = 72 }
 0x21f   :  { %319 = vsyncpa [#allocation5], 1 }
 0x220   :  { %321 = vsyncpa [#allocation5 + $0x1], 1 }

</bundles_post_ra>
